<compile_context>
chip_gen: v7x
topology: tpu7x:2x2x1
jax: 0.10.0
libtpu: 0.0.40
codegen_flags: <defaults>
</compile_context>

<pallas_src>
import functools

import numpy as np
import jax
import jax.numpy as jnp
from jax import lax
from jax.experimental import pallas as pl
from jax.experimental.pallas import tpu as pltpu

_LANES = 128


def _ceil_div(a, b):
    return -(-a // b)


# --------------------------------------------------------------------------
# Parameter init (EfficientLEAF analytic mel filterbank init)
# --------------------------------------------------------------------------
def mel_filter_params(n_filters, min_freq, max_freq, sample_rate):
    """Center frequencies (rad/sample) and time-domain Gaussian sigmas."""
    min_mel = 1127.0 * np.log1p(min_freq / 700.0)
    max_mel = 1127.0 * np.log1p(max_freq / 700.0)
    peaks_mel = np.linspace(min_mel, max_mel, n_filters + 2)
    peaks_hz = 700.0 * np.expm1(peaks_mel / 1127.0)
    center_freqs = peaks_hz[1:-1] * (2.0 * np.pi / sample_rate)
    bandwidths_hz = peaks_hz[2:] - peaks_hz[:-2]
    sigmas = (sample_rate / 2.0) / bandwidths_hz
    return center_freqs.astype(np.float32), sigmas.astype(np.float32)


# --------------------------------------------------------------------------
# Pallas kernel 1: Gabor conv + |.|^2 + Gaussian pooling + log1p  (fused)
# --------------------------------------------------------------------------
def _gabor_pool_log1p_kernel(ch_ref, filt_ref, gw_ref, scale_ref, out_ref, *,
                             n_frames, nsub, pool_width, n_filters):
    # 1) strided Gabor conv as nsub accumulated matmuls.  Frame j's window is
    #    chunk rows j..j+nsub-1, so the r-th stride-wide sub-kernel multiplies
    #    chunk rows shifted by r -- no im2col is ever materialized in HBM.
    acc = jnp.dot(ch_ref[0, 0:n_frames, :], filt_ref[0],
                  preferred_element_type=jnp.float32)
    for r in range(1, nsub):
        acc = acc + jnp.dot(ch_ref[0, r:r + n_frames, :], filt_ref[r],
                            preferred_element_type=jnp.float32)

    # 2) squared modulus: cos bank in lanes [0:128), sin bank in [128:256).
    s_re = acc[:, :_LANES]
    s_im = acc[:, _LANES:]
    sq = s_re * s_re + s_im * s_im                          # (F, 128)

    # 3) Gaussian low-pass pooling over frames ("same" padding with zeros).
    half = pool_width // 2
    zpad = jnp.zeros((half, _LANES), jnp.float32)
    sq_ext = jnp.concatenate([zpad, sq, zpad], axis=0)      # (F + 2*half, 128)
    pooled = sq_ext[0:n_frames, :] * gw_ref[0:1, :]
    for k in range(1, pool_width):
        pooled = pooled + sq_ext[k:k + n_frames, :] * gw_ref[k:k + 1, :]

    # 4) per-band log1p(10**a * x) compression.
    comp = jnp.log(1.0 + scale_ref[...] * pooled)           # (F, 128)
    out_ref[0] = comp[:, :n_filters]


def gabor_pool_log1p(chunks, filt, gw, scale, n_frames, n_filters, pool_width):
    """chunks: (B, NC, stride); filt: (nsub, stride, 256); gw: (P, 128);
    scale: (1, 128).  Returns (B, n_frames, n_filters)."""
    B, NC, sub = chunks.shape
    nsub = filt.shape[0]
    kernel = functools.partial(_gabor_pool_log1p_kernel, n_frames=n_frames,
                               nsub=nsub, pool_width=pool_width,
                               n_filters=n_filters)
    return pl.pallas_call(
        kernel,
        out_shape=jax.ShapeDtypeStruct((B, n_frames, n_filters), jnp.float32),
        grid=(B,),
        in_specs=[
            pl.BlockSpec((1, NC, sub), lambda b: (b, 0, 0)),
            pl.BlockSpec(filt.shape, lambda b: (0, 0, 0)),
            pl.BlockSpec(gw.shape, lambda b: (0, 0)),
            pl.BlockSpec(scale.shape, lambda b: (0, 0)),
        ],
        out_specs=pl.BlockSpec((1, n_frames, n_filters), lambda b: (b, 0, 0)),
        compiler_params=pltpu.CompilerParams(dimension_semantics=("parallel",)),
    )(chunks, filt, gw, scale)


# --------------------------------------------------------------------------
# Pallas kernel 2: (x, x - median) channels + temporal batch norm  (fused)
# --------------------------------------------------------------------------
def _median_bn_kernel(zc_ref, med_ref, gam_ref, bet_ref, out_ref, *, eps,
                      inv_count):
    chan = pl.program_id(1)                         # 0: raw, 1: median-filtered
    flag = chan.astype(jnp.float32)
    x = zc_ref[...] - med_ref[...] * flag                       # (B, tc, F)
    mean = jnp.sum(jnp.sum(x, axis=2, keepdims=True),
                   axis=0, keepdims=True) * inv_count           # (1, tc, 1)
    d = x - mean
    var = jnp.sum(jnp.sum(d * d, axis=2, keepdims=True),
                  axis=0, keepdims=True) * inv_count
    out_ref[...] = d * lax.rsqrt(var + eps) * gam_ref[...] + bet_ref[...]


def median_bn(zc, med, gamma, beta, eps=1e-5):
    """zc: (B, C, F); med: (B, C, 1); gamma/beta: (2, C, 1).
    Returns (B, 2, C, F) with training-mode batch-norm over (batch, time)."""
    B, C, F = zc.shape
    tc = 8 if C % 8 == 0 else C
    nct = C // tc
    kernel = functools.partial(_median_bn_kernel, eps=eps,
                               inv_count=1.0 / float(B * F))
    return pl.pallas_call(
        kernel,
        out_shape=jax.ShapeDtypeStruct((B, 2, C, F), jnp.float32),
        grid=(nct, 2),
        in_specs=[
            pl.BlockSpec((B, tc, F), lambda i, ch: (0, i, 0)),
            pl.BlockSpec((B, tc, 1), lambda i, ch: (0, i, 0)),
            pl.BlockSpec((None, tc, 1), lambda i, ch: (ch, i, 0)),
            pl.BlockSpec((None, tc, 1), lambda i, ch: (ch, i, 0)),
        ],
        out_specs=pl.BlockSpec((B, None, tc, F), lambda i, ch: (0, ch, i, 0)),
        compiler_params=pltpu.CompilerParams(
            dimension_semantics=("parallel", "arbitrary")),
    )(zc, med, gamma, beta)


# --------------------------------------------------------------------------
# ELeaf module (JAX glue around the Pallas kernels)
# --------------------------------------------------------------------------
class ELeafPallas:
    def __init__(self, n_filters=40, num_groups=4, min_freq=60.0,
                 max_freq=7800.0, sample_rate=16000, window_len=25.0,
                 window_stride=10.0, conv_win_factor=4.77, stride_factor=1.0):
        assert n_filters <= _LANES, "packed filterbank assumes n_filters <= 128"
        self.n_filters = n_filters

        window_size = int(sample_rate * window_len / 1000.0)
        window_size += 1 - (window_size % 2)                      # odd -> 401
        self.filter_size = window_size
        self.pool_size = window_size
        self.pool_stride = int(sample_rate * window_stride / 1000.0)     # 160
        self.conv_stride = max(1, int(self.pool_stride * stride_factor))
        self.pool_conv_stride = max(1, self.pool_stride // self.conv_stride)
        pw = int(np.ceil(self.pool_size / self.conv_stride))
        pw += 1 - (pw % 2)                                        # odd window
        self.pool_width = max(3, pw)

        # ---- deterministic parameter init (EfficientLeaf defaults) ----
        cf, sg = mel_filter_params(n_filters, min_freq, max_freq, sample_rate)
        z = np.sqrt(2.0 * np.log(2.0)) / np.pi
        sigma_lo, sigma_hi = 4.0 * z, self.filter_size * z
        mu = np.clip(cf, 0.0, np.pi)
        sig = np.clip(sg, sigma_lo, sigma_hi)

        # per-group kernel sizes of the grouped conv, merged into one bank
        # with per-filter support masks (centers aligned at kmax//2 so the
        # 'same' padding of every group is preserved exactly).
        fpg = -(-n_filters // num_groups)
        half_support = np.zeros((n_filters,), np.int64)
        kmax = 1
        for g in range(num_groups):
            beg, end = g * fpg, min((g + 1) * fpg, n_filters)
            if beg >= end:
                continue
            ksz = int(np.max(sig[beg:end]) * conv_win_factor)
            ksz += 1 - (ksz % 2)
            half_support[beg:end] = ksz // 2
            kmax = max(kmax, ksz)
        self.kmax = kmax
        self.nsub = _ceil_div(kmax, self.conv_stride)
        self.win_width = self.nsub * self.conv_stride

        t = np.arange(self.win_width, dtype=np.float64) - (kmax // 2)
        sig64 = sig.astype(np.float64)[:, None]
        gauss = np.exp(-(t[None, :] ** 2) / (2.0 * sig64 ** 2))
        denom = 1.0 / (np.sqrt(2.0 * np.pi) * sig64)
        mask = (np.abs(t)[None, :] <= half_support[:, None]).astype(np.float64)
        wcos = denom * np.cos(mu[:, None] * t[None, :]) * gauss * mask
        wsin = denom * np.sin(mu[:, None] * t[None, :]) * gauss * mask
        filt = np.zeros((self.win_width, 2 * _LANES), np.float32)
        filt[:, :n_filters] = wcos.T
        filt[:, _LANES:_LANES + n_filters] = wsin.T
        self.filt = jnp.asarray(
            filt.reshape(self.nsub, self.conv_stride, 2 * _LANES))

        # learned Gaussian low-pass pooling weights, (pool_width, 128)
        pooling_widths = np.full((n_filters,), 0.4, np.float32)
        sig_p = np.clip(pooling_widths, 2.0 / self.pool_size, 0.5)
        u = (np.arange(self.pool_width, dtype=np.float32)
             * (2.0 / (self.pool_width - 1)) - 1.0)
        gw = np.zeros((self.pool_width, _LANES), np.float32)
        gw[:, :n_filters] = np.exp(-0.5 * (u[:, None] / sig_p[None, :]) ** 2)
        self.gw = jnp.asarray(gw)

        # per-band log1p scale 10**a (a=5), (1, 128)
        log1p_a = np.full((n_filters,), 5.0, np.float32)
        scale = np.ones((1, _LANES), np.float32)
        scale[0, :n_filters] = 10.0 ** log1p_a
        self.scale = jnp.asarray(scale)

        # temporal batch-norm affine params (gamma=1, beta=0), (2, C, 1)
        self.bn_gamma = jnp.ones((2, n_filters, 1), jnp.float32)
        self.bn_beta = jnp.zeros((2, n_filters, 1), jnp.float32)

    def __call__(self, x):
        x = jnp.asarray(x, jnp.float32)
        if x.ndim == 3:            # accept (B, 1, T) like the torch module
            x = x[:, 0, :]
        B, T = x.shape
        s = self.conv_stride
        n_frames = (T - 1) // s + 1

        # reshape the padded signal into stride-wide chunk rows: frame j's
        # window == chunk rows j .. j+nsub-1 (no redundant im2col in HBM).
        nc = n_frames + self.nsub - 1
        needed = nc * s
        pad_left = self.kmax // 2
        pad_right = max(0, needed - pad_left - T)
        xp = jnp.pad(x, ((0, 0), (pad_left, pad_right)))[:, :needed]
        chunks = xp.reshape(B, nc, s)

        # 1) fused Gabor filterbank + |.|^2 + Gaussian pooling + log1p (Pallas)
        zc_bfc = gabor_pool_log1p(chunks, self.filt, self.gw, self.scale,
                                  n_frames, self.n_filters, self.pool_width)
        if self.pool_conv_stride > 1:
            zc_bfc = zc_bfc[:, ::self.pool_conv_stride, :]
        zc = jnp.transpose(zc_bfc, (0, 2, 1))                   # (B, C, F)
        F = zc.shape[-1]

        # 2) median over time (torch.median semantics: lower middle element)
        # TODO(synk): sort has no clean Pallas TPU equivalent; median stays in XLA.
        med = jnp.sort(zc, axis=-1)[..., (F - 1) // 2][..., None]   # (B, C, 1)

        # 3) fused (x, x - median) channels + temporal batch norm (Pallas)
        return median_bn(zc, med, self.bn_gamma, self.bn_beta)     # (B,2,C,F)


if __name__ == "__main__":
    key = jax.random.PRNGKey(0)
    B, T = 2, 4000                     # 0.25 s of 16 kHz audio (small demo)
    x = jax.random.normal(key, (B, T), dtype=jnp.float32)

    model = ELeafPallas()
    fwd = jax.jit(model.__call__)
    out = jax.block_until_ready(fwd(x))

    expected_frames = (T - 1) // model.conv_stride + 1
    assert out.shape == (B, 2, model.n_filters, expected_frames), out.shape
    assert bool(jnp.all(jnp.isfinite(out)))
    print("KERNEL_OK")
</pallas_src>

<mosaic_0001>
module attributes {stable_mosaic.version = 11 : i64} {
  func.func @_gabor_pool_log1p_kernel(%arg0: i32, %arg1: memref<1x27x160xf32, #tpu.memory_space<vmem>>, %arg2: memref<3x160x256xf32, #tpu.memory_space<vmem>>, %arg3: memref<3x128xf32, #tpu.memory_space<vmem>>, %arg4: memref<1x128xf32, #tpu.memory_space<vmem>>, %arg5: memref<1x25x40xf32, #tpu.memory_space<vmem>>) attributes {dimension_semantics = [#tpu.dimension_semantics<parallel>], iteration_bounds = array<i64: 2>, scalar_prefetch = 0 : i64, scratch_operands = 0 : i64, tpu.core_type = #tpu.core_type<tc>, window_params = [{transform_indices = @transform_0, window_bounds = array<i64: 1, 27, 160>}, {pipeline_mode = #tpu.pipeline_mode<synchronous>, transform_indices = @transform_1, window_bounds = array<i64: 3, 160, 256>}, {pipeline_mode = #tpu.pipeline_mode<synchronous>, transform_indices = @transform_2, window_bounds = array<i64: 3, 128>}, {pipeline_mode = #tpu.pipeline_mode<synchronous>, transform_indices = @transform_3, window_bounds = array<i64: 1, 128>}, {transform_indices = @transform_4, window_bounds = array<i64: 1, 25, 40>}]} {
    %c0 = arith.constant 0 : index
    %c0_0 = arith.constant 0 : index
    %c0_1 = arith.constant 0 : index
    %0 = vector.load %arg1[%c0, %c0_0, %c0_1] : memref<1x27x160xf32, #tpu.memory_space<vmem>>, vector<1x25x160xf32>
    %1 = vector.shape_cast %0 : vector<1x25x160xf32> to vector<25x160xf32>
    %c0_2 = arith.constant 0 : index
    %c0_3 = arith.constant 0 : index
    %c0_4 = arith.constant 0 : index
    %2 = vector.load %arg2[%c0_2, %c0_3, %c0_4] : memref<3x160x256xf32, #tpu.memory_space<vmem>>, vector<1x160x256xf32>
    %3 = vector.shape_cast %2 : vector<1x160x256xf32> to vector<160x256xf32>
    %cst = arith.constant dense<0.000000e+00> : vector<25x256xf32>
    %4 = tpu.matmul %1, %3, %cst {dimension_numbers = #tpu.dot_dimension_numbers<[1], [0], [0], [1], [0, 0, 1, 1], [], []>} : vector<25x160xf32>, vector<160x256xf32>, vector<25x256xf32> -> vector<25x256xf32>
    %c0_5 = arith.constant 0 : index
    %c1 = arith.constant 1 : index
    %c0_6 = arith.constant 0 : index
    %5 = vector.load %arg1[%c0_5, %c1, %c0_6] : memref<1x27x160xf32, #tpu.memory_space<vmem>>, vector<1x25x160xf32>
    %6 = vector.shape_cast %5 : vector<1x25x160xf32> to vector<25x160xf32>
    %c1_7 = arith.constant 1 : index
    %c0_8 = arith.constant 0 : index
    %c0_9 = arith.constant 0 : index
    %7 = vector.load %arg2[%c1_7, %c0_8, %c0_9] : memref<3x160x256xf32, #tpu.memory_space<vmem>>, vector<1x160x256xf32>
    %8 = vector.shape_cast %7 : vector<1x160x256xf32> to vector<160x256xf32>
    %cst_10 = arith.constant dense<0.000000e+00> : vector<25x256xf32>
    %9 = tpu.matmul %6, %8, %cst_10 {dimension_numbers = #tpu.dot_dimension_numbers<[1], [0], [0], [1], [0, 0, 1, 1], [], []>} : vector<25x160xf32>, vector<160x256xf32>, vector<25x256xf32> -> vector<25x256xf32>
    %10 = arith.addf %4, %9 : vector<25x256xf32>
    %c0_11 = arith.constant 0 : index
    %c2 = arith.constant 2 : index
    %c0_12 = arith.constant 0 : index
    %11 = vector.load %arg1[%c0_11, %c2, %c0_12] : memref<1x27x160xf32, #tpu.memory_space<vmem>>, vector<1x25x160xf32>
    %12 = vector.shape_cast %11 : vector<1x25x160xf32> to vector<25x160xf32>
    %c2_13 = arith.constant 2 : index
    %c0_14 = arith.constant 0 : index
    %c0_15 = arith.constant 0 : index
    %13 = vector.load %arg2[%c2_13, %c0_14, %c0_15] : memref<3x160x256xf32, #tpu.memory_space<vmem>>, vector<1x160x256xf32>
    %14 = vector.shape_cast %13 : vector<1x160x256xf32> to vector<160x256xf32>
    %cst_16 = arith.constant dense<0.000000e+00> : vector<25x256xf32>
    %15 = tpu.matmul %12, %14, %cst_16 {dimension_numbers = #tpu.dot_dimension_numbers<[1], [0], [0], [1], [0, 0, 1, 1], [], []>} : vector<25x160xf32>, vector<160x256xf32>, vector<25x256xf32> -> vector<25x256xf32>
    %16 = arith.addf %10, %15 : vector<25x256xf32>
    %17 = vector.extract_strided_slice %16 {offsets = [0, 0], sizes = [25, 128], strides = [1, 1]} : vector<25x256xf32> to vector<25x128xf32>
    %18 = vector.extract_strided_slice %16 {offsets = [0, 128], sizes = [25, 128], strides = [1, 1]} : vector<25x256xf32> to vector<25x128xf32>
    %19 = arith.mulf %17, %17 : vector<25x128xf32>
    %20 = arith.mulf %18, %18 : vector<25x128xf32>
    %21 = arith.addf %19, %20 : vector<25x128xf32>
    %cst_17 = arith.constant 0.000000e+00 : f32
    %22 = vector.broadcast %cst_17 : f32 to vector<1x128xf32>
    %23 = tpu.concatenate %22, %21, %22 in 0 : vector<1x128xf32>, vector<25x128xf32>, vector<1x128xf32> -> vector<27x128xf32>
    %24 = vector.extract_strided_slice %23 {offsets = [0, 0], sizes = [25, 128], strides = [1, 1]} : vector<27x128xf32> to vector<25x128xf32>
    %c0_18 = arith.constant 0 : index
    %c0_19 = arith.constant 0 : index
    %25 = vector.load %arg3[%c0_18, %c0_19] : memref<3x128xf32, #tpu.memory_space<vmem>>, vector<1x128xf32>
    %26 = vector.broadcast %25 : vector<1x128xf32> to vector<25x128xf32>
    %27 = arith.mulf %24, %26 : vector<25x128xf32>
    %28 = vector.extract_strided_slice %23 {offsets = [1, 0], sizes = [25, 128], strides = [1, 1]} : vector<27x128xf32> to vector<25x128xf32>
    %c1_20 = arith.constant 1 : index
    %c0_21 = arith.constant 0 : index
    %29 = vector.load %arg3[%c1_20, %c0_21] : memref<3x128xf32, #tpu.memory_space<vmem>>, vector<1x128xf32>
    %30 = vector.broadcast %29 : vector<1x128xf32> to vector<25x128xf32>
    %31 = arith.mulf %28, %30 : vector<25x128xf32>
    %32 = arith.addf %27, %31 : vector<25x128xf32>
    %33 = vector.extract_strided_slice %23 {offsets = [2, 0], sizes = [25, 128], strides = [1, 1]} : vector<27x128xf32> to vector<25x128xf32>
    %c2_22 = arith.constant 2 : index
    %c0_23 = arith.constant 0 : index
    %34 = vector.load %arg3[%c2_22, %c0_23] : memref<3x128xf32, #tpu.memory_space<vmem>>, vector<1x128xf32>
    %35 = vector.broadcast %34 : vector<1x128xf32> to vector<25x128xf32>
    %36 = arith.mulf %33, %35 : vector<25x128xf32>
    %37 = arith.addf %32, %36 : vector<25x128xf32>
    %c0_24 = arith.constant 0 : index
    %c0_25 = arith.constant 0 : index
    %38 = vector.load %arg4[%c0_24, %c0_25] : memref<1x128xf32, #tpu.memory_space<vmem>>, vector<1x128xf32>
    %39 = vector.broadcast %38 : vector<1x128xf32> to vector<25x128xf32>
    %40 = arith.mulf %39, %37 : vector<25x128xf32>
    %cst_26 = arith.constant 1.000000e+00 : f32
    %41 = vector.broadcast %cst_26 : f32 to vector<25x128xf32>
    %42 = arith.addf %41, %40 : vector<25x128xf32>
    %43 = math.log %42 : vector<25x128xf32>
    %44 = vector.extract_strided_slice %43 {offsets = [0, 0], sizes = [25, 40], strides = [1, 1]} : vector<25x128xf32> to vector<25x40xf32>
    %c0_27 = arith.constant 0 : index
    %c0_28 = arith.constant 0 : index
    %c0_29 = arith.constant 0 : index
    %45 = vector.load %arg5[%c0_27, %c0_28, %c0_29] : memref<1x25x40xf32, #tpu.memory_space<vmem>>, vector<1x25x40xf32>
    %46 = vector.shape_cast %45 : vector<1x25x40xf32> to vector<25x40xf32>
    %47 = vector.shape_cast %44 : vector<25x40xf32> to vector<1x25x40xf32>
    tpu.vector_store %arg5[%c0_27, %c0_28, %c0_29], %47 {strides = array<i32>} : memref<1x25x40xf32, #tpu.memory_space<vmem>>, vector<1x25x40xf32>,
    return
  }
  func.func @transform_0(%arg0: i32) -> (i32, i32, i32) {
    %c0_i32 = arith.constant 0 : i32
    %c0_i32_0 = arith.constant 0 : i32
    %c0_i32_1 = arith.constant 0 : i32
    return %arg0, %c0_i32, %c0_i32_0 : i32, i32, i32
  }
  func.func @transform_1(%arg0: i32) -> (i32, i32, i32) {
    %c0_i32 = arith.constant 0 : i32
    %c0_i32_0 = arith.constant 0 : i32
    %c0_i32_1 = arith.constant 0 : i32
    %c0_i32_2 = arith.constant 0 : i32
    return %c0_i32, %c0_i32_0, %c0_i32_1 : i32, i32, i32
  }
  func.func @transform_2(%arg0: i32) -> (i32, i32) {
    %c0_i32 = arith.constant 0 : i32
    %c0_i32_0 = arith.constant 0 : i32
    %c0_i32_1 = arith.constant 0 : i32
    return %c0_i32, %c0_i32_0 : i32, i32
  }
  func.func @transform_3(%arg0: i32) -> (i32, i32) {
    %c0_i32 = arith.constant 0 : i32
    %c0_i32_0 = arith.constant 0 : i32
    %c0_i32_1 = arith.constant 0 : i32
    return %c0_i32, %c0_i32_0 : i32, i32
  }
  func.func @transform_4(%arg0: i32) -> (i32, i32, i32) {
    %c0_i32 = arith.constant 0 : i32
    %c0_i32_0 = arith.constant 0 : i32
    %c0_i32_1 = arith.constant 0 : i32
    return %arg0, %c0_i32, %c0_i32_0 : i32, i32, i32
  }
}

module attributes {stable_mosaic.version = 11 : i64} {
  func.func @_median_bn_kernel(%arg0: i32, %arg1: i32, %arg2: memref<2x8x25xf32, #tpu.memory_space<vmem>>, %arg3: memref<2x8x1xf32, #tpu.memory_space<vmem>>, %arg4: memref<1x8x1xf32, #tpu.memory_space<vmem>>, %arg5: memref<1x8x1xf32, #tpu.memory_space<vmem>>, %arg6: memref<2x1x8x25xf32, #tpu.memory_space<vmem>>) attributes {dimension_semantics = [#tpu.dimension_semantics<parallel>, #tpu.dimension_semantics<arbitrary>], iteration_bounds = array<i64: 5, 2>, scalar_prefetch = 0 : i64, scratch_operands = 0 : i64, tpu.core_type = #tpu.core_type<tc>, window_params = [{transform_indices = @transform_0, window_bounds = array<i64: 2, 8, 25>}, {transform_indices = @transform_1, window_bounds = array<i64: 2, 8, 1>}, {transform_indices = @transform_2, window_bounds = array<i64: 1, 8, 1>}, {transform_indices = @transform_3, window_bounds = array<i64: 1, 8, 1>}, {transform_indices = @transform_4, window_bounds = array<i64: 2, 1, 8, 25>}]} {
    %0 = arith.sitofp %arg1 : i32 to f32
    %c0 = arith.constant 0 : index
    %c0_0 = arith.constant 0 : index
    %c0_1 = arith.constant 0 : index
    %1 = vector.load %arg2[%c0, %c0_0, %c0_1] : memref<2x8x25xf32, #tpu.memory_space<vmem>>, vector<2x8x25xf32>
    %c0_2 = arith.constant 0 : index
    %c0_3 = arith.constant 0 : index
    %c0_4 = arith.constant 0 : index
    %2 = vector.load %arg3[%c0_2, %c0_3, %c0_4] : memref<2x8x1xf32, #tpu.memory_space<vmem>>, vector<2x8x1xf32>
    %3 = vector.broadcast %0 : f32 to vector<2x8x1xf32>
    %4 = arith.mulf %2, %3 : vector<2x8x1xf32>
    %5 = vector.broadcast %4 : vector<2x8x1xf32> to vector<2x8x25xf32>
    %6 = arith.subf %1, %5 : vector<2x8x25xf32>
    %cst = arith.constant dense<0.000000e+00> : vector<2x8xf32>
    %7 = vector.multi_reduction <add>, %6, %cst [2] : vector<2x8x25xf32> to vector<2x8xf32>
    %8 = vector.shape_cast %7 : vector<2x8xf32> to vector<2x8x1xf32>
    %cst_5 = arith.constant dense<0.000000e+00> : vector<8x1xf32>
    %9 = vector.multi_reduction <add>, %8, %cst_5 [0] : vector<2x8x1xf32> to vector<8x1xf32>
    %10 = vector.shape_cast %9 : vector<8x1xf32> to vector<1x8x1xf32>
    %cst_6 = arith.constant 2.000000e-02 : f32
    %11 = vector.broadcast %cst_6 : f32 to vector<1x8x1xf32>
    %12 = arith.mulf %10, %11 : vector<1x8x1xf32>
    %13 = vector.broadcast %12 : vector<1x8x1xf32> to vector<2x8x25xf32>
    %14 = arith.subf %6, %13 : vector<2x8x25xf32>
    %15 = arith.mulf %14, %14 : vector<2x8x25xf32>
    %cst_7 = arith.constant dense<0.000000e+00> : vector<2x8xf32>
    %16 = vector.multi_reduction <add>, %15, %cst_7 [2] : vector<2x8x25xf32> to vector<2x8xf32>
    %17 = vector.shape_cast %16 : vector<2x8xf32> to vector<2x8x1xf32>
    %cst_8 = arith.constant dense<0.000000e+00> : vector<8x1xf32>
    %18 = vector.multi_reduction <add>, %17, %cst_8 [0] : vector<2x8x1xf32> to vector<8x1xf32>
    %19 = vector.shape_cast %18 : vector<8x1xf32> to vector<1x8x1xf32>
    %cst_9 = arith.constant 2.000000e-02 : f32
    %20 = vector.broadcast %cst_9 : f32 to vector<1x8x1xf32>
    %21 = arith.mulf %19, %20 : vector<1x8x1xf32>
    %cst_10 = arith.constant 9.99999974E-6 : f32
    %22 = vector.broadcast %cst_10 : f32 to vector<1x8x1xf32>
    %23 = arith.addf %21, %22 : vector<1x8x1xf32>
    %24 = math.rsqrt %23 : vector<1x8x1xf32>
    %25 = vector.broadcast %24 : vector<1x8x1xf32> to vector<2x8x25xf32>
    %26 = arith.mulf %14, %25 : vector<2x8x25xf32>
    %c0_11 = arith.constant 0 : index
    %c0_12 = arith.constant 0 : index
    %c0_13 = arith.constant 0 : index
    %27 = vector.load %arg4[%c0_11, %c0_12, %c0_13] : memref<1x8x1xf32, #tpu.memory_space<vmem>>, vector<1x8x1xf32>
    %28 = vector.shape_cast %27 : vector<1x8x1xf32> to vector<8x1xf32>
    %29 = vector.shape_cast %28 : vector<8x1xf32> to vector<1x8x1xf32>
    %30 = vector.broadcast %29 : vector<1x8x1xf32> to vector<2x8x25xf32>
    %31 = arith.mulf %26, %30 : vector<2x8x25xf32>
    %c0_14 = arith.constant 0 : index
    %c0_15 = arith.constant 0 : index
    %c0_16 = arith.constant 0 : index
    %32 = vector.load %arg5[%c0_14, %c0_15, %c0_16] : memref<1x8x1xf32, #tpu.memory_space<vmem>>, vector<1x8x1xf32>
    %33 = vector.shape_cast %32 : vector<1x8x1xf32> to vector<8x1xf32>
    %34 = vector.shape_cast %33 : vector<8x1xf32> to vector<1x8x1xf32>
    %35 = vector.broadcast %34 : vector<1x8x1xf32> to vector<2x8x25xf32>
    %36 = arith.addf %31, %35 : vector<2x8x25xf32>
    %c0_17 = arith.constant 0 : index
    %c0_18 = arith.constant 0 : index
    %c0_19 = arith.constant 0 : index
    %c0_20 = arith.constant 0 : index
    %37 = vector.load %arg6[%c0_17, %c0_18, %c0_19, %c0_20] : memref<2x1x8x25xf32, #tpu.memory_space<vmem>>, vector<2x1x8x25xf32>
    %38 = vector.shape_cast %37 : vector<2x1x8x25xf32> to vector<2x8x25xf32>
    %39 = vector.shape_cast %36 : vector<2x8x25xf32> to vector<2x1x8x25xf32>
    tpu.vector_store %arg6[%c0_17, %c0_18, %c0_19, %c0_20], %39 {strides = array<i32>} : memref<2x1x8x25xf32, #tpu.memory_space<vmem>>, vector<2x1x8x25xf32>,
    return
  }
  func.func @transform_0(%arg0: i32, %arg1: i32) -> (i32, i32, i32) {
    %c0_i32 = arith.constant 0 : i32
    %c0_i32_0 = arith.constant 0 : i32
    %c0_i32_1 = arith.constant 0 : i32
    return %c0_i32, %arg0, %c0_i32_0 : i32, i32, i32
  }
  func.func @transform_1(%arg0: i32, %arg1: i32) -> (i32, i32, i32) {
    %c0_i32 = arith.constant 0 : i32
    %c0_i32_0 = arith.constant 0 : i32
    %c0_i32_1 = arith.constant 0 : i32
    return %c0_i32, %arg0, %c0_i32_0 : i32, i32, i32
  }
  func.func @transform_2(%arg0: i32, %arg1: i32) -> (i32, i32, i32) {
    %c0_i32 = arith.constant 0 : i32
    %c0_i32_0 = arith.constant 0 : i32
    return %arg1, %arg0, %c0_i32 : i32, i32, i32
  }
  func.func @transform_3(%arg0: i32, %arg1: i32) -> (i32, i32, i32) {
    %c0_i32 = arith.constant 0 : i32
    %c0_i32_0 = arith.constant 0 : i32
    return %arg1, %arg0, %c0_i32 : i32, i32, i32
  }
  func.func @transform_4(%arg0: i32, %arg1: i32) -> (i32, i32, i32, i32) {
    %c0_i32 = arith.constant 0 : i32
    %c0_i32_0 = arith.constant 0 : i32
    %c0_i32_1 = arith.constant 0 : i32
    return %c0_i32, %arg1, %arg0, %c0_i32_0 : i32, i32, i32, i32
  }
}

</mosaic_0001>

<bundles_post_ra>
// kernel: a_call__.2
= control target key start
LH: loop header
LB: loop body
LE: loop exit
PB: predicated region body
PF: predicated region fallthrough
CT: control target
= control target key end

     0   :  { %9 = vsyncpa [#allocation3], 0  ;;  %s1179_s15 = smov 0   ;;  %s1347_s0 = inlined_call_operand.vmem [shape: f32[2,27,160], index: 0, kind: input, shape index: {}]   ;;  %s1348_s1 = inlined_call_operand.hbm [shape: f32[3,160,256], index: 1, kind: input, shape index: {}]   ;;  %s1349_s2 = inlined_call_operand.vmem [shape: f32[3,128], index: 2, kind: input, shape index: {}]   ;;  %s1350_s3 = inlined_call_operand.vmem [shape: f32[1,128], index: 3, kind: input, shape index: {}]   ;;  %s1351_s4 = inlined_call_operand.vmem [shape: f32[2,25,40], index: 4, kind: output, shape index: {}]  }
   0x1 LB: > { %s1185_s16 = sadd.s32 4294967295, %s1149_s15   ;;  %p897_p0 = scmp.ge.s32.totalorder %s1149_s15, 1  ;;  %s1149_s15 = sphi %s1179_s15, %s15_s15  }
   0x2   : > { %p135_p1 = scmp.lt.s32.totalorder %s1149_s15, 3  ;;  %s1151_s17 = smov [#allocation2]  }
   0x3   : > { %s147_s18 = sshll.u32 %s1151_s17, 4  ;;  %p1352_p3 = scmp.eq.s32.totalorder %s1185_s16, 0  ;;  %s148_s18 = int_to_ptr.vmem [resolvable:$true] %s147_s18 }
   0x4   : > { %p1189_p2 = pnand %p897_p0, %p135_p1  ;;  %s1111_s23 = scalar_lea.hbm %s1348_s1, 15360 }
   0x5   : > { %p1112_p6 = scmp.ne.s32.totalorder %s1348_s1, %s1111_s23  ;;  %p1118_p10 = scmp.lt.u32.totalorder %s1111_s23, %s1348_s1 }
   0x6   : > { %s1354_s19 = scalar_select %p1189_p2, 1, 0 }
   0x7   : > { %p1086_p4 = pneg %p1189_p2 }
   0x9   : > { %p1198_p5 = pnand %p1352_p3, %p1086_p4 }
   0xb   : > { %p1113_p7 = pneg %p1198_p5 }
   0xd   : > { %p1114_p8 = pnand %p1113_p7, %p1112_p6 }
   0xf   : > { %p1115_p9 = pneg %p1114_p8 }
  0x11   : > { %p1120_p11 = pnand %p1118_p10, %p1115_p9 }
  0x13   : > { %1123 = shalt.err (!%p1120_p11)
}
  0x14   : > { %s1124_s28 = scalar_lea.vmem %s148_s18, 15360  ;;  %p1132_p1 = scmp.lt.s32.totalorder %s148_s18, %s148_s18 }
  0x15   : > { %p1125_p12 = scmp.ne.s32.totalorder %s148_s18, %s1124_s28  ;;  %p1133_p4 = scmp.lt.s32.totalorder %s1124_s28, %s1124_s28 }
  0x17   : > { %p1127_p13 = pnand %p1125_p12, %p1113_p7  ;;  %p1134_p3 = por %p1133_p4, %p1132_p1 }
  0x19   : > { %p1128_p0 = pneg %p1127_p13 }
  0x1b   : > { %p1135_p2 = pnand %p1134_p3, %p1128_p0 }
  0x1d   : > { %1138 = shalt.err (!%p1135_p2)
}
  0x1e   : > { %s1152_s29 = smov 256   ;;  %s1153_s30 = smov 16  }
  0x1f   : > { %1089 = dma.hbm_to_vmem [thread:$0]  (!%p1198_p5), %s1348_s1, 15360, %s148_s18, [#allocation3], %s1152_s29, %s1152_s29, %s1153_s30  }
  0x20   : > { %p1356_p6 = scmp.ne.s32.totalorder %s1354_s19, 0 }
  0x21   : > { %p1357_p8 = scmp.eq.s32.totalorder (!%p1356_p6), %s1185_s16, 0 }
  0x22   : > { %177 = sbr.rel (%p1356_p6) target bundleno = 383 (0x17f), region = 36 }
  0x29   : > { %1144 = dma.done.wait (%p1357_p8), [#allocation3], 15360   ;;  %p1358_p7 = pmov %p1357_p8 }
  0x2a   : > { %v267_v0 = vld [vmem:[#allocation2 + $0x148] sm:$0xff]  ;;  %v269_v1 = vld [vmem:[#allocation2 + $0x158] sm:$0xff]  ;;  %v266_v5 = vld [vmem:[#allocation2 + $0x140] sm:$0xff]  ;;  %p203_p2 = scmp.lt.s32.totalorder %s1185_s16, 1  ;;  %vm314_vm0 = vcmask 1046528   ;;  %vm333_vm1 = vcmask 261120  }
  0x2b   : > { %1146 = vsyncadd (%p1358_p7), [#allocation3], 4294951936  ;;  %v222_v2 = vld [vmem:[#allocation2 + $0x8] sm:$0xff]  ;;  %v926_v3 = vpack.c.bf16 %v269_v1, %v267_v0  ;;  %v224_v4 = vld [vmem:[#allocation2 + $0x18] sm:$0xff]  ;;  %vm579_vm2 = vcmask 1045504   ;;  %vm719_vm3 = vcmask 1040384  }
  0x2c   : > { %v268_v6 = vld [vmem:[#allocation2 + $0x150] sm:$0xff]  ;;  %v966_v7 = vpack.c.bf16 %v224_v4, %v222_v2  ;;  %v221_v9 = vld [vmem:[#allocation2] sm:$0xff]  ;;  %v271_v11 = vld [vmem:[#allocation2 + $0x168] sm:$0xff]  ;;  %s1360_s16 = smov (!%p203_p2, %s1185_s16), 1  ;;  %vm732_vm4 = vcmask 1041408   ;;  %vm822_vm5 = vcmask 326656  }
  0x2d   : > { %v928_v8 = vpack.c.bf16 %v268_v6, %v266_v5  ;;  %v223_v10 = vld [vmem:[#allocation2 + $0x10] sm:$0xff]  ;;  %927 = vmatprep.subr.bf16.mxu1 %v926_v3  ;;  %v273_v13 = vld [vmem:[#allocation2 + $0x178] sm:$0xff]  ;;  %v226_v14 = vld [vmem:[#allocation2 + $0x28] sm:$0xff]  ;;  %s924_s7 = sshll.u32 %s1360_s16, 6  ;;  %s925_s21 = sshll.u32 %s1360_s16, 5  ;;  %vm826_vm6 = vcmask 319488  }
  0x2e   : > { %v968_v12 = vpack.c.bf16 %v223_v10, %v221_v9  ;;  %v228_v15 = vld [vmem:[#allocation2 + $0x38] sm:$0xff]  ;;  %967 = vmatprep.subr.bf16.mxu0 %v966_v7  ;;  %v930_v16 = vpack.c.bf16 %v273_v13, %v271_v11  ;;  %v270_v18 = vld [vmem:[#allocation2 + $0x160] sm:$0xff]  ;;  %v272_v19 = vld [vmem:[#allocation2 + $0x170] sm:$0xff]  ;;  %s1234_s10 = scalar_lea.vmem %s1347_s0, %s924_s7  ;;  %s212_s24 = scalar_lea.vmem %s1351_s4, %s925_s21 }
  0x2f   : > { %929 = vmatpush1.bf16.msra.mxu1 %v928_v8  ;;  %v970_v17 = vpack.c.bf16 %v228_v15, %v226_v14  ;;  %v225_v20 = vld [vmem:[#allocation2 + $0x20] sm:$0xff]  ;;  %v932_v21 = vpack.c.bf16 %v272_v19, %v270_v18  ;;  %v227_v22 = vld [vmem:[#allocation2 + $0x30] sm:$0xff]  ;;  %v275_v23 = vld [vmem:[#allocation2 + $0x188] sm:$0xff] }
  0x30   : > { %969 = vmatpush1.bf16.msra.mxu0 %v968_v12  ;;  %v277_v24 = vld [vmem:[#allocation2 + $0x198] sm:$0xff]  ;;  %931 = vmatprep.subr.bf16.mxu1 %v930_v16  ;;  %v972_v25 = vpack.c.bf16 %v227_v22, %v225_v20  ;;  %v230_v27 = vld [vmem:[#allocation2 + $0x48] sm:$0xff]  ;;  %v274_v29 = vld [vmem:[#allocation2 + $0x180] sm:$0xff] }
  0x31   : > { %971 = vmatprep.subr.bf16.mxu0 %v970_v17  ;;  %v934_v26 = vpack.c.bf16 %v277_v24, %v275_v23  ;;  %v232_v28 = vld [vmem:[#allocation2 + $0x58] sm:$0xff]  ;;  %v276_v31 = vld [vmem:[#allocation2 + $0x190] sm:$0xff]  ;;  %v229_v32 = vld [vmem:[#allocation2 + $0x40] sm:$0xff] }
  0x32   : > { %v974_v30 = vpack.c.bf16 %v232_v28, %v230_v27  ;;  %v231_v33 = vld [vmem:[#allocation2 + $0x50] sm:$0xff]  ;;  %v936_v34 = vpack.c.bf16 %v276_v31, %v274_v29  ;;  %v279_v35 = vld [vmem:[#allocation2 + $0x1a8] sm:$0xff]  ;;  %v281_v36 = vld [vmem:[#allocation2 + $0x1b8] sm:$0xff] }
  0x33   : > { %933 = vmatpush1.bf16.msra.mxu1 %v932_v21  ;;  %v234_v37 = vld [vmem:[#allocation2 + $0x68] sm:$0xff]  ;;  %v976_v38 = vpack.c.bf16 %v231_v33, %v229_v32  ;;  %v938_v39 = vpack.c.bf16 %v281_v36, %v279_v35  ;;  %v236_v40 = vld [vmem:[#allocation2 + $0x78] sm:$0xff]  ;;  %v278_v41 = vld [vmem:[#allocation2 + $0x1a0] sm:$0xff] }
  0x34   : > { %973 = vmatpush1.bf16.msra.mxu0 %v972_v25  ;;  %935 = vmatprep.subr.bf16.mxu1 %v934_v26  ;;  %v280_v42 = vld [vmem:[#allocation2 + $0x1b0] sm:$0xff]  ;;  %v978_v43 = vpack.c.bf16 %v236_v40, %v234_v37  ;;  %v233_v44 = vld [vmem:[#allocation2 + $0x60] sm:$0xff]  ;;  %v283_v46 = vld [vmem:[#allocation2 + $0x1c8] sm:$0xff] }
  0x35   : > { %975 = vmatprep.subr.bf16.mxu0 %v974_v30  ;;  %v235_v45 = vld [vmem:[#allocation2 + $0x70] sm:$0xff]  ;;  %v285_v47 = vld [vmem:[#allocation2 + $0x1d8] sm:$0xff]  ;;  %v238_v48 = vld [vmem:[#allocation2 + $0x88] sm:$0xff]  ;;  %v940_v50 = vpack.c.bf16 %v280_v42, %v278_v41 }
  0x36   : > { %v240_v49 = vld [vmem:[#allocation2 + $0x98] sm:$0xff]  ;;  %v980_v51 = vpack.c.bf16 %v235_v45, %v233_v44  ;;  %v942_v52 = vpack.c.bf16 %v285_v47, %v283_v46  ;;  %v282_v53 = vld [vmem:[#allocation2 + $0x1c0] sm:$0xff]  ;;  %v284_v54 = vld [vmem:[#allocation2 + $0x1d0] sm:$0xff] }
  0x37   : > { %937 = vmatpush1.bf16.msra.mxu1 %v936_v34  ;;  %v237_v55 = vld [vmem:[#allocation2 + $0x80] sm:$0xff]  ;;  %v982_v56 = vpack.c.bf16 %v240_v49, %v238_v48  ;;  %v239_v57 = vld [vmem:[#allocation2 + $0x90] sm:$0xff]  ;;  %v287_v58 = vld [vmem:[#allocation2 + $0x1e8] sm:$0xff]  ;;  %v944_v62 = vpack.c.bf16 %v284_v54, %v282_v53 }
  0x38   : > { %977 = vmatpush1.bf16.msra.mxu0 %v976_v38  ;;  %939 = vmatprep.subr.bf16.mxu1 %v938_v39  ;;  %v289_v59 = vld [vmem:[#allocation2 + $0x1f8] sm:$0xff]  ;;  %v242_v60 = vld [vmem:[#allocation2 + $0xa8] sm:$0xff]  ;;  %v984_v63 = vpack.c.bf16 %v239_v57, %v237_v55  ;;  %v286_v1 = vld [vmem:[#allocation2 + $0x1e0] sm:$0xff] }
  0x39   : > { %979 = vmatprep.subr.bf16.mxu0 %v978_v43  ;;  %v244_v61 = vld [vmem:[#allocation2 + $0xb8] sm:$0xff]  ;;  %v946_v0 = vpack.c.bf16 %v289_v59, %v287_v58  ;;  %v288_v2 = vld [vmem:[#allocation2 + $0x1f0] sm:$0xff]  ;;  %v241_v3 = vld [vmem:[#allocation2 + $0xa0] sm:$0xff] }
  0x3a   : > { %v986_v4 = vpack.c.bf16 %v244_v61, %v242_v60  ;;  %v243_v5 = vld [vmem:[#allocation2 + $0xb0] sm:$0xff]  ;;  %v291_v6 = vld [vmem:[#allocation2 + $0x208] sm:$0xff]  ;;  %v293_v7 = vld [vmem:[#allocation2 + $0x218] sm:$0xff]  ;;  %v948_v10 = vpack.c.bf16 %v288_v2, %v286_v1 }
  0x3b   : > { %941 = vmatpush1.bf16.msra.mxu1 %v940_v50  ;;  %v246_v8 = vld [vmem:[#allocation2 + $0xc8] sm:$0xff]  ;;  %v248_v9 = vld [vmem:[#allocation2 + $0xd8] sm:$0xff]  ;;  %v988_v11 = vpack.c.bf16 %v243_v5, %v241_v3  ;;  %v950_v12 = vpack.c.bf16 %v293_v7, %v291_v6  ;;  %v290_v13 = vld [vmem:[#allocation2 + $0x200] sm:$0xff] }
  0x3c   : > { %981 = vmatpush1.bf16.msra.mxu0 %v980_v51  ;;  %943 = vmatprep.subr.bf16.mxu1 %v942_v52  ;;  %v292_v14 = vld [vmem:[#allocation2 + $0x210] sm:$0xff]  ;;  %v245_v15 = vld [vmem:[#allocation2 + $0xc0] sm:$0xff]  ;;  %v990_v16 = vpack.c.bf16 %v248_v9, %v246_v8  ;;  %v295_v18 = vld [vmem:[#allocation2 + $0x228] sm:$0xff] }
  0x3d   : > { %983 = vmatprep.subr.bf16.mxu0 %v982_v56  ;;  %v247_v17 = vld [vmem:[#allocation2 + $0xd0] sm:$0xff]  ;;  %v297_v19 = vld [vmem:[#allocation2 + $0x238] sm:$0xff]  ;;  %v250_v20 = vld [vmem:[#allocation2 + $0xe8] sm:$0xff]  ;;  %v952_v22 = vpack.c.bf16 %v292_v14, %v290_v13 }
  0x3e   : > { %v252_v21 = vld [vmem:[#allocation2 + $0xf8] sm:$0xff]  ;;  %v294_v23 = vld [vmem:[#allocation2 + $0x220] sm:$0xff]  ;;  %v992_v24 = vpack.c.bf16 %v247_v17, %v245_v15  ;;  %v954_v25 = vpack.c.bf16 %v297_v19, %v295_v18  ;;  %v296_v26 = vld [vmem:[#allocation2 + $0x230] sm:$0xff] }
  0x3f   : > { %945 = vmatpush1.bf16.msra.mxu1 %v944_v62  ;;  %v249_v27 = vld [vmem:[#allocation2 + $0xe0] sm:$0xff]  ;;  %v251_v28 = vld [vmem:[#allocation2 + $0xf0] sm:$0xff]  ;;  %v994_v29 = vpack.c.bf16 %v252_v21, %v250_v20  ;;  %v299_v30 = vld [vmem:[#allocation2 + $0x248] sm:$0xff]  ;;  %v956_v37 = vpack.c.bf16 %v296_v26, %v294_v23 }
  0x40   : > { %985 = vmatpush1.bf16.msra.mxu0 %v984_v63  ;;  %947 = vmatprep.subr.bf16.mxu1 %v946_v0  ;;  %v301_v31 = vld [vmem:[#allocation2 + $0x258] sm:$0xff]  ;;  %v254_v33 = vld [vmem:[#allocation2 + $0x108] sm:$0xff]  ;;  %v996_v40 = vpack.c.bf16 %v251_v28, %v249_v27  ;;  %v298_v42 = vld [vmem:[#allocation2 + $0x240] sm:$0xff] }
  0x41   : > { %987 = vmatprep.subr.bf16.mxu0 %v986_v4  ;;  %v1237_v32 = vld [vmem:[%s1234_s10 + $0x18] sm:$0xff]  ;;  %v262_v35 = vld [vmem:[%s1234_s10 + $0x8] sm:$0xfe]  ;;  %v958_v41 = vpack.c.bf16 %v301_v31, %v299_v30  ;;  %v300_v43 = vld [vmem:[#allocation2 + $0x250] sm:$0xff] }
  0x42   : > { %v256_v34 = vld [vmem:[#allocation2 + $0x118] sm:$0xff]  ;;  %v319_v36 = vrot.slane %v1237_v32, 1  ;;  %v318_v38 = vrot.slane %v262_v35, 1  ;;  %v214_v39 = vld [vmem:[%s1234_s10 + $0x8] sm:$0xff]  ;;  %v253_v44 = vld [vmem:[#allocation2 + $0x100] sm:$0xff]  ;;  %v960_v52 = vpack.c.bf16 %v300_v43, %v298_v42 }
  0x43   : > { %949 = vmatpush1.bf16.msra.mxu1 %v948_v10  ;;  %v998_v45 = vpack.c.bf16 %v256_v34, %v254_v33  ;;  %v255_v46 = vld [vmem:[#allocation2 + $0x110] sm:$0xff]  ;;  %v303_v47 = vld [vmem:[#allocation2 + $0x268] sm:$0xff]  ;;  %v305_v48 = vld [vmem:[#allocation2 + $0x278] sm:$0xff]  ;;  %910 = vmatprep.mubr.msk.f32.mxu0 %vm333_vm1, %v214_v39 }
  0x44   : > { %989 = vmatpush1.bf16.msra.mxu0 %v988_v11  ;;  %951 = vmatprep.subr.bf16.mxu1 %v950_v12  ;;  %v320_v49 = vsel %vm314_vm0, %v318_v38, %v319_v36  ;;  %v258_v50 = vld [vmem:[#allocation2 + $0x128] sm:$0xff]  ;;  %v260_v51 = vld [vmem:[#allocation2 + $0x138] sm:$0xff]  ;;  %v302_v53 = vld [vmem:[#allocation2 + $0x260] sm:$0xff]  ;;  %v1000_v55 = vpack.c.bf16 %v255_v46, %v253_v44  ;;  %v962_v56 = vpack.c.bf16 %v305_v48, %v303_v47 }
  0x45   : > { %991 = vmatprep.subr.bf16.mxu0 %v990_v16  ;;  %906 = vmatprep.mubr.msk.f32.mxu1 %vm333_vm1, %v320_v49  ;;  %v304_v54 = vld [vmem:[#allocation2 + $0x270] sm:$0xff]  ;;  %v257_v57 = vld [vmem:[#allocation2 + $0x120] sm:$0xff]  ;;  %v1002_v60 = vpack.c.bf16 %v260_v51, %v258_v50  ;;  %v536_v62 = vld [vmem:[#allocation2 + $0x288] sm:$0xff] }
  0x46   : > { %v1248_v58 = vld [vmem:[%s1234_s10 + $0x10] sm:$0xff]  ;;  %v261_v59 = vld [vmem:[%s1234_s10] sm:$0xfe]  ;;  %v538_v63 = vld [vmem:[#allocation2 + $0x298] sm:$0xff]  ;;  %v964_v0 = vpack.c.bf16 %v304_v54, %v302_v53 }
  0x47   : > { %953 = vmatpush1.bf16.msra.mxu1 %v952_v22  ;;  %v259_v61 = vld [vmem:[#allocation2 + $0x130] sm:$0xff]  ;;  %v315_v1 = vrot.slane %v261_v59, 1  ;;  %v316_v2 = vrot.slane %v1248_v58, 1  ;;  %v1006_v4 = vpack.c.bf16 %v538_v63, %v536_v62  ;;  %v535_v5 = vld [vmem:[#allocation2 + $0x280] sm:$0xff]  ;;  %v540_v7 = vld [vmem:[#allocation2 + $0x2a8] sm:$0xff] }
  0x48   : > { %993 = vmatpush1.bf16.msra.mxu0 %v992_v24  ;;  %955 = vmatprep.subr.bf16.mxu1 %v954_v25  ;;  %v1004_v3 = vpack.c.bf16 %v259_v61, %v257_v57  ;;  %v537_v6 = vld [vmem:[#allocation2 + $0x290] sm:$0xff]  ;;  %v542_v8 = vld [vmem:[#allocation2 + $0x2b8] sm:$0xff]  ;;  %v1253_v9 = vld [vmem:[%s1234_s10 + $0x28] sm:$0xff] }
  0x49   : > { %995 = vmatprep.subr.bf16.mxu0 %v994_v29  ;;  %v1256_v10 = vld [vmem:[%s1234_s10 + $0x20] sm:$0xff]  ;;  %v323_v11 = vrot.slane %v1253_v9, 1  ;;  %v317_v12 = vsel %vm314_vm0, %v315_v1, %v316_v2  ;;  %v1008_v14 = vpack.c.bf16 %v537_v6, %v535_v5  ;;  %v1263_v16 = vld [vmem:[%s1234_s10 + $0x38] sm:$0x3]  ;;  %v1010_v17 = vpack.c.bf16 %v542_v8, %v540_v7  ;;  %v541_v19 = vld [vmem:[#allocation2 + $0x2b0] sm:$0xff] }
  0x4a   : > { %v213_v13 = vld [vmem:[%s1234_s10] sm:$0xff]  ;;  %v321_v15 = vrot.slane %v1256_v10, 1  ;;  %v263_v20 = vld [vmem:[%s1234_s10 + $0x30] sm:$0x3]  ;;  %v544_v21 = vld [vmem:[#allocation2 + $0x2c8] sm:$0xff]  ;;  %v327_v24 = vrot.slane %v1263_v16, 1 }
  0x4b   : > { %957 = vmatpush1.bf16.msra.mxu1 %v956_v37  ;;  %v539_v18 = vld [vmem:[#allocation2 + $0x2a0] sm:$0xff]  ;;  %v546_v22 = vld [vmem:[#allocation2 + $0x2d8] sm:$0xff]  ;;  %v324_v23 = vsel %vm314_vm0, %v319_v36, %v323_v11  ;;  %v325_v27 = vrot.slane %v263_v20, 1  ;;  %v545_v30 = vld [vmem:[#allocation2 + $0x2d0] sm:$0xff]  ;;  %v588_v48 = vrot.slane %v1253_v9, 2 }
  0x4c   : > { %997 = vmatpush1.bf16.msra.mxu0 %v996_v40  ;;  %959 = vmatprep.subr.bf16.mxu1 %v958_v41  ;;  %v1012_v25 = vpack.c.bf16 %v541_v19, %v539_v18  ;;  %v322_v26 = vsel %vm314_vm0, %v316_v2, %v321_v15  ;;  %v1014_v28 = vpack.c.bf16 %v546_v22, %v544_v21  ;;  %v543_v29 = vld [vmem:[#allocation2 + $0x2c0] sm:$0xff]  ;;  %v548_v31 = vld [vmem:[#allocation2 + $0x2e8] sm:$0xff]  ;;  %v550_v33 = vld [vmem:[#allocation2 + $0x2f8] sm:$0xff] }
  0x4d   : > { %999 = vmatprep.subr.bf16.mxu0 %v998_v45  ;;  %v328_v34 = vsel %vm314_vm0, %v323_v11, %v327_v24  ;;  %v1016_v35 = vpack.c.bf16 %v545_v30, %v543_v29  ;;  %v326_v36 = vsel %vm314_vm0, %v321_v15, %v325_v27  ;;  %v531_v37 = vld [vmem:[%s1234_s10 + $0x8] sm:$0xfc]  ;;  %v1018_v38 = vpack.c.bf16 %v550_v33, %v548_v31  ;;  %v547_v39 = vld [vmem:[#allocation2 + $0x2e0] sm:$0xff]  ;;  %v549_v40 = vld [vmem:[#allocation2 + $0x2f0] sm:$0xff] }
  0x4e   : > { %v1279_v41 = vld [vmem:[%s1234_s10 + $0x38] sm:$0x7]  ;;  %v552_v42 = vld [vmem:[#allocation2 + $0x308] sm:$0xff]  ;;  %v583_v44 = vrot.slane %v531_v37, 2  ;;  %v584_v45 = vrot.slane %v1237_v32, 2  ;;  %v1020_v46 = vpack.c.bf16 %v549_v40, %v547_v39  ;;  %v551_v51 = vld [vmem:[#allocation2 + $0x300] sm:$0xff] }
  0x4f   : > { %961 = vmatpush1.bf16.msra.mxu1 %v960_v52  ;;  %v554_v43 = vld [vmem:[#allocation2 + $0x318] sm:$0xff]  ;;  %v592_v49 = vrot.slane %v1279_v41, 2  ;;  %v553_v52 = vld [vmem:[#allocation2 + $0x310] sm:$0xff]  ;;  %v556_v54 = vld [vmem:[#allocation2 + $0x328] sm:$0xff]  ;;  %v581_v31 = vrot.slane %v1248_v58, 2 }
  0x50   : > { %1001 = vmatpush1.bf16.msra.mxu0 %v1000_v55  ;;  %963 = vmatprep.subr.bf16.mxu1 %v962_v56  ;;  %v220_v47 = vld [vmem:[%s1234_s10 + $0x38] sm:$0x1]  ;;  %v1022_v50 = vpack.c.bf16 %v554_v43, %v552_v42  ;;  %v219_v53 = vld [vmem:[%s1234_s10 + $0x30] sm:$0x1]  ;;  %v585_v56 = vsel %vm579_vm2, %v583_v44, %v584_v45  ;;  %v1024_v57 = vpack.c.bf16 %v553_v52, %v551_v51  ;;  %v555_v61 = vld [vmem:[#allocation2 + $0x320] sm:$0xff] }
  0x51   : > { %1003 = vmatprep.subr.bf16.mxu0 %v1002_v60  ;;  %v558_v55 = vld [vmem:[#allocation2 + $0x338] sm:$0xff]  ;;  %v593_v59 = vsel %vm579_vm2, %v588_v48, %v592_v49  ;;  %v557_v62 = vld [vmem:[#allocation2 + $0x330] sm:$0xff]  ;;  %v560_v63 = vld [vmem:[#allocation2 + $0x348] sm:$0xff] }
  0x52   : > { %v1026_v60 = vpack.c.bf16 %v558_v55, %v556_v54  ;;  %v1028_v1 = vpack.c.bf16 %v557_v62, %v555_v61  ;;  %v564_v5 = vld [vmem:[#allocation2 + $0x368] sm:$0xff]  ;;  %v566_v6 = vld [vmem:[#allocation2 + $0x378] sm:$0xff]  ;;  %v563_v11 = vld [vmem:[#allocation2 + $0x360] sm:$0xff] }
  0x53   : > { %965 = vmatpush1.bf16.msra.mxu1 %v964_v0  ;;  %v562_v0 = vld [vmem:[#allocation2 + $0x358] sm:$0xff]  ;;  %v1034_v8 = vpack.c.bf16 %v566_v6, %v564_v5  ;;  %v569_v18 = vld [vmem:[#allocation2 + $0x390] sm:$0xff]  ;;  %v572_v19 = vld [vmem:[#allocation2 + $0x3a8] sm:$0xff] }
  0x54   : > { %1005 = vmatpush1.bf16.msra.mxu0 %v1004_v3  ;;  %1046 = vmatprep.subr.bf16.mxu1 %v1006_v4  ;;  %v1030_v2 = vpack.c.bf16 %v562_v0, %v560_v63  ;;  %v559_v3 = vld [vmem:[#allocation2 + $0x340] sm:$0xff]  ;;  %v574_v20 = vld [vmem:[#allocation2 + $0x3b8] sm:$0xff] }
  0x55   : > { %1007 = vmatprep.subr.bf16.mxu0 %v1006_v4  ;;  %v561_v4 = vld [vmem:[#allocation2 + $0x350] sm:$0xff]  ;;  %v1042_v22 = vpack.c.bf16 %v574_v20, %v572_v19 }
  0x56   : > { %407 = vmatmul.mubr.f32.vlgmr.msra.gmra.mrb[0].mxu1 %v317_v12  ;;  %v1032_v7 = vpack.c.bf16 %v561_v4, %v559_v3  ;;  %v565_v12 = vld [vmem:[#allocation2 + $0x370] sm:$0xff] }
  0x57   : > { %506 = vmatmul.mubr.f32.vlgmr.msra.gmra.mrb[0].mxu0 %v213_v13  ;;  %1056 = vmatpush1.bf16.msra.mxu1 %v1008_v14  ;;  %v568_v13 = vld [vmem:[#allocation2 + $0x388] sm:$0xff]  ;;  %v1036_v15 = vpack.c.bf16 %v565_v12, %v563_v11 }
  0x58   : > { %1009 = vmatpush1.bf16.msra.mxu0 %v1008_v14  ;;  %1047 = vmatprep.subr.bf16.mxu1 %v1010_v17  ;;  %v570_v14 = vld [vmem:[#allocation2 + $0x398] sm:$0xff] }
  0x59   : > { %1011 = vmatprep.subr.bf16.mxu0 %v1010_v17  ;;  %907 = vmatprep.mubr.msk.f32.mxu1 %vm333_vm1, %v324_v23  ;;  %v1038_v16 = vpack.c.bf16 %v570_v14, %v568_v13  ;;  %v567_v17 = vld [vmem:[#allocation2 + $0x380] sm:$0xff] }
  0x5a   : > { %911 = vmatprep.mubr.msk.f32.mxu0 %vm333_vm1, %v1237_v32  ;;  %413 = vmatmul.mubr.f32.gmra.mrb[2].mxu1 %v322_v26  ;;  %v1040_v21 = vpack.c.bf16 %v569_v18, %v567_v17  ;;  %v571_v23 = vld [vmem:[#allocation2 + $0x3a0] sm:$0xff] }
  0x5b   : > { %1057 = vmatpush1.bf16.msra.mxu1 %v1012_v25  ;;  %512 = vmatmul.mubr.f32.gmra.mrb[2].mxu0 %v1248_v58  ;;  %v530_v26 = vld [vmem:[%s1234_s10] sm:$0xfc]  ;;  %v919_v14 = vld [vmem:[%s1349_s2 + $0x1] ss:$0 sm:$0xff] }
  0x5c   : > { %1013 = vmatpush1.bf16.msra.mxu0 %v1012_v25  ;;  %1048 = vmatprep.subr.bf16.mxu1 %v1014_v28  ;;  %v532_v25 = vld [vmem:[%s1234_s10 + $0x30] sm:$0x7]  ;;  %v580_v30 = vrot.slane %v530_v26, 2 }
  0x5d   : > { %1015 = vmatprep.subr.bf16.mxu0 %v1014_v28  ;;  %908 = vmatprep.mubr.msk.f32.mxu1 %vm333_vm1, %v328_v34  ;;  %v586_v28 = vrot.slane %v1256_v10, 2  ;;  %v590_v29 = vrot.slane %v532_v25, 2 }
  0x5e   : > { %912 = vmatprep.mubr.msk.f32.mxu0 %vm333_vm1, %v1253_v9  ;;  %419 = vmatmul.mubr.f32.gmra.mrb[4].mxu1 %v326_v36  ;;  %v582_v34 = vsel %vm579_vm2, %v580_v30, %v581_v31 }
  0x5f   : > { %1058 = vmatpush1.bf16.msra.mxu1 %v1016_v35  ;;  %518 = vmatmul.mubr.f32.gmra.mrb[4].mxu0 %v1256_v10  ;;  %v591_v33 = vsel %vm579_vm2, %v586_v28, %v590_v29  ;;  %v587_v58 = vsel %vm579_vm2, %v581_v31, %v586_v28 }
  0x60   : > { %1017 = vmatpush1.bf16.msra.mxu0 %v1016_v35  ;;  %1049 = vmatprep.subr.bf16.mxu1 %v1018_v38  ;;  %v589_v35 = vsel %vm579_vm2, %v584_v45, %v588_v48 }
  0x61   : > { %1019 = vmatprep.subr.bf16.mxu0 %v1018_v38  ;;  %909 = vmatprep.mubr.msk.f32.mxu1 %vm333_vm1, %v327_v24  ;;  %v573_v24 = vld [vmem:[#allocation2 + $0x3b0] sm:$0xff] }
  0x62   : > { %913 = vmatprep.mubr.msk.f32.mxu0 %vm333_vm1, %v220_v47  ;;  %425 = vmatmul.mubr.f32.gmra.mrb[6].mxu1 %v325_v27  ;;  %v1044_v27 = vpack.c.bf16 %v573_v24, %v571_v23  ;;  %v918_v23 = vld [vmem:[%s1349_s2] ss:$0 sm:$0xff] }
  0x63   : > { %1059 = vmatpush1.bf16.msra.mxu1 %v1020_v46  ;;  %524 = vmatmul.mubr.f32.gmra.mrb[6].mxu0 %v219_v53 }
  0x64   : > { %1021 = vmatpush1.bf16.msra.mxu0 %v1020_v46  ;;  %1050 = vmatprep.subr.bf16.mxu1 %v1022_v50 }
  0x65   : > { %1023 = vmatprep.subr.bf16.mxu0 %v1022_v50  ;;  %914 = vmatprep.mubr.msk.f32.mxu0 %vm333_vm1, %v585_v56 }
  0x66   : > { %916 = vmatprep.mubr.msk.f32.mxu1 %vm333_vm1, %v593_v59 }
  0x67   : > { %1060 = vmatpush1.bf16.msra.mxu1 %v1024_v57 }
  0x68   : > { %1025 = vmatpush1.bf16.msra.mxu0 %v1024_v57  ;;  %1051 = vmatprep.subr.bf16.mxu1 %v1026_v60 }
  0x69   : > { %1027 = vmatprep.subr.bf16.mxu0 %v1026_v60 }
  0x6b   : > { %1061 = vmatpush1.bf16.msra.mxu1 %v1028_v1 }
  0x6c   : > { %1029 = vmatpush1.bf16.msra.mxu0 %v1028_v1  ;;  %1052 = vmatprep.subr.bf16.mxu1 %v1030_v2 }
  0x6d   : > { %1031 = vmatprep.subr.bf16.mxu0 %v1030_v2 }
  0x6f   : > { %1062 = vmatpush1.bf16.msra.mxu1 %v1032_v7 }
  0x70   : > { %1033 = vmatpush1.bf16.msra.mxu0 %v1032_v7  ;;  %1053 = vmatprep.subr.bf16.mxu1 %v1034_v8 }
  0x71   : > { %1035 = vmatprep.subr.bf16.mxu0 %v1034_v8 }
  0x73   : > { %1063 = vmatpush1.bf16.msra.mxu1 %v1036_v15 }
  0x74   : > { %1037 = vmatpush1.bf16.msra.mxu0 %v1036_v15  ;;  %1054 = vmatprep.subr.bf16.mxu1 %v1038_v16 }
  0x75   : > { %1039 = vmatprep.subr.bf16.mxu0 %v1038_v16  ;;  %v920_v16 = vld [vmem:[%s1349_s2 + $0x2] ss:$0 sm:$0xff] }
  0x77   : > { %1064 = vmatpush1.bf16.msra.mxu1 %v1040_v21 }
  0x78   : > { %1041 = vmatpush1.bf16.msra.mxu0 %v1040_v21  ;;  %1055 = vmatprep.subr.bf16.mxu1 %v1042_v22 }
  0x79   : > { %1043 = vmatprep.subr.bf16.mxu0 %v1042_v22 }
  0x7b   : > { %1065 = vmatpush1.bf16.msra.mxu1 %v1044_v27 }
  0x7c   : > { %1045 = vmatpush1.bf16.msra.mxu0 %v1044_v27 }
  0x7e   : > { %683 = vmatmul.mubr.f32.vlgmr.msra.gmra.mrb[8].mxu1 %v591_v33 }
  0x7f   : > { %671 = vmatmul.mubr.f32.vlgmr.msra.gmra.mrb[0].mxu0 %v582_v34  ;;  %917 = vmatprep.mubr.msk.f32.mxu1 %vm333_vm1, %v592_v49 }
  0x80   : > { %915 = vmatprep.mubr.msk.f32.mxu0 %vm333_vm1, %v589_v35 }
  0x82   : > { %689 = vmatmul.mubr.f32.gmra.mrb[10].mxu1 %v590_v29 }
  0x83   : > { %677 = vmatmul.mubr.f32.gmra.mrb[2].mxu0 %v587_v58 }
 0x129   : > { %v408_v10 = vpop.f32.mrb[0].mxu1 }
 0x12a   : > { %v410_v36 = vpop.f32.mrb[1].mxu1 }
 0x12d   : > { %v414_v37 = vpop.f32.mrb[2].mxu1 }
 0x12e   : > { %v416_v9 = vpop.f32.mrb[3].mxu1 }
 0x131   : > { %v420_v38 = vpop.f32.mrb[4].mxu1 }
 0x132   : > { %v519_v32 = vpop.f32.mrb[4].mxu0  ;;  %v422_v39 = vpop.f32.mrb[5].mxu1 }
 0x133   : > { %v520_v40 = vadd.f32 %v519_v32, %v420_v38  ;;  %v521_v42 = vpop.f32.mrb[5].mxu0 }
 0x134   : > { %v522_v43 = vadd.f32 %v521_v42, %v422_v39 }
 0x135   : > { %v426_v44 = vpop.f32.mrb[6].mxu1 }
 0x136   : > { %v525_v41 = vpop.f32.mrb[6].mxu0  ;;  %v428_v45 = vpop.f32.mrb[7].mxu1 }
 0x137   : > { %v526_v46 = vadd.f32 %v525_v41, %v426_v44  ;;  %v527_v47 = vpop.f32.mrb[7].mxu0 }
 0x138   : > { %v528_v48 = vadd.f32 %v527_v47, %v428_v45 }
 0x151   : > { %v684_v49 = vpop.f32.mrb[8].mxu1 }
 0x152   : > { %v672_v50 = vpop.f32.mrb[0].mxu0  ;;  %v699_v51 = vadd.f32 %v684_v49, %v520_v40  ;;  %v686_v52 = vpop.f32.mrb[9].mxu1 }
 0x153   : > { %v1066_v53 = vadd.f32 %v672_v50, %v408_v10  ;;  %v674_v54 = vpop.f32.mrb[1].mxu0  ;;  %v700_v55 = vadd.f32 %v686_v52, %v522_v43 }
 0x154   : > { %v705_v56 = vmul.f32 %v699_v51, %v699_v51  ;;  %v1067_v57 = vadd.f32 %v674_v54, %v410_v36  ;;  %v921_v51 = vld [vmem:[%s1350_s3] ss:$0 sm:$0xff] }
 0x155   : > { %v703_v59 = vmul.f32 %v1066_v53, %v1066_v53  ;;  %v709_v60 = vmul.f32 %v700_v55, %v700_v55  ;;  %v690_v61 = vpop.f32.mrb[10].mxu1 }
 0x156   : > { %v707_v62 = vmul.f32 %v1067_v57, %v1067_v57  ;;  %v678_v63 = vpop.f32.mrb[2].mxu0  ;;  %v701_v0 = vadd.f32 %v690_v61, %v526_v46  ;;  %v692_v1 = vpop.f32.mrb[11].mxu1 }
 0x157   : > { %v713_v2 = vadd.f32 %v709_v60, %v705_v56  ;;  %v1068_v3 = vadd.f32 %v678_v63, %v414_v37  ;;  %v680_v4 = vpop.f32.mrb[3].mxu0  ;;  %v702_v5 = vadd.f32 %v692_v1, %v528_v48 }
 0x158   : > { %v711_v6 = vadd.f32 %v707_v62, %v703_v59  ;;  %v706_v7 = vmul.f32 %v701_v0, %v701_v0  ;;  %v1069_v8 = vadd.f32 %v680_v4, %v416_v9 }
 0x159   : > { %v704_v11 = vmul.f32 %v1068_v3, %v1068_v3  ;;  %v710_v12 = vmul.f32 %v702_v5, %v702_v5  ;;  %v723_v21 = vrot.slane %v713_v2, 7 }
 0x15a   : > { %v720_v13 = vrot.slane %v711_v6, 7  ;;  %v708_v15 = vmul.f32 %v1069_v8, %v1069_v8 }
 0x15b   : > { %v714_v17 = vadd.f32 %v710_v12, %v706_v7 }
 0x15c   : > { %v731_v18 = vsel %vm719_vm3, 0.0, %v720_v13  ;;  %v712_v19 = vadd.f32 %v708_v15, %v704_v11 }
 0x15d   : > { %v748_v20 = vmul.f32 %v919_v14, %v731_v18  ;;  %v725_v22 = vrot.slane %v714_v17, 7  ;;  %v776_v24 = vmul.f32 %v920_v16, %v731_v18  ;;  %v739_v30 = vmul.f32 %v918_v23, %v731_v18 }
 0x15e   : > { %v721_v25 = vrot.slane %v712_v19, 7 }
 0x15f   : > { %v726_v26 = vsel %vm719_vm3, %v723_v21, %v725_v22  ;;  %v756_v31 = vrot.slane %v748_v20, 1  ;;  %v784_v35 = vrot.slane %v776_v24, 2 }
 0x160   : > { %v722_v27 = vsel %vm719_vm3, %v720_v13, %v721_v25  ;;  %v724_v28 = vsel %vm719_vm3, %v721_v25, %v723_v21  ;;  %v733_v29 = vsel %vm732_vm4, %v726_v26, 0.0 }
 0x161   : > { %v749_v33 = vmul.f32 %v919_v14, %v722_v27  ;;  %v750_v34 = vmul.f32 %v919_v14, %v724_v28  ;;  %v777_v58 = vmul.f32 %v920_v16, %v722_v27  ;;  %v778_v10 = vmul.f32 %v920_v16, %v724_v28 }
 0x162   : > { %v751_v36 = vmul.f32 %v919_v14, %v733_v29  ;;  %v740_v37 = vmul.f32 %v918_v23, %v722_v27  ;;  %v779_v32 = vmul.f32 %v920_v16, %v733_v29  ;;  %v741_v39 = vmul.f32 %v918_v23, %v724_v28 }
 0x163   : > { %v757_v9 = vrot.slane %v749_v33, 1  ;;  %v759_v38 = vrot.slane %v750_v34, 1  ;;  %v785_v40 = vrot.slane %v777_v58, 2  ;;  %v787_v42 = vrot.slane %v778_v10, 2 }
 0x164   : > { %v761_v43 = vrot.slane %v751_v36, 1  ;;  %v742_v45 = vmul.f32 %v918_v23, %v733_v29  ;;  %v789_v46 = vrot.slane %v779_v32, 2 }
 0x165   : > { %v758_v44 = vsel %vm314_vm0, %v756_v31, %v757_v9  ;;  %v760_v41 = vsel %vm314_vm0, %v757_v9, %v759_v38  ;;  %v786_v49 = vsel %vm579_vm2, %v784_v35, %v785_v40  ;;  %v788_v50 = vsel %vm579_vm2, %v785_v40, %v787_v42 }
 0x166   : > { %v767_v47 = vadd.f32 %v758_v44, %v739_v30  ;;  %v768_v48 = vadd.f32 %v760_v41, %v740_v37  ;;  %v762_v52 = vsel %vm314_vm0, %v759_v38, %v761_v43  ;;  %v770_v53 = vadd.f32 %v761_v43, %v742_v45 }
 0x167   : > { %v790_v54 = vsel %vm579_vm2, %v787_v42, %v789_v46  ;;  %v769_v57 = vadd.f32 %v762_v52, %v741_v39 }
 0x168   : > { %v795_v55 = vadd.f32 %v786_v49, %v767_v47  ;;  %v796_v56 = vadd.f32 %v788_v50, %v768_v48  ;;  %v798_v59 = vadd.f32 %v789_v46, %v770_v53 }
 0x169   : > { %v797_v62 = vadd.f32 %v790_v54, %v769_v57 }
 0x16a   : > { %v806_v60 = vmul.f32 %v921_v51, %v795_v55  ;;  %v807_v61 = vmul.f32 %v921_v51, %v796_v56  ;;  %v809_v63 = vmul.f32 %v921_v51, %v798_v59 }
 0x16b   : > { %v808_v2 = vmul.f32 %v921_v51, %v797_v62 }
 0x16c   : > { %v810_v0 = vadd.f32 1.0, %v806_v60  ;;  %v811_v1 = vadd.f32 1.0, %v807_v61  ;;  %v813_v3 = vadd.f32 1.0, %v809_v63 }
 0x16d   : > { %v812_v4 = vadd.f32 1.0, %v808_v2 }
 0x16e   : > { %1103 = vlog2.f32 %v810_v0 }
 0x16f   : > { %1105 = vlog2.f32 %v811_v1 }
 0x170   : > { %1107 = vlog2.f32 %v812_v4 }
 0x171   : > { %1109 = vlog2.f32 %v813_v3 }
 0x178   : > { %v1104_v5 = vpop.eup %1103 }
 0x179   : > { %v1106_v6 = vpop.eup %1105  ;;  %v815_v7 = vmul.f32 0.6931472, %v1104_v5 }
 0x17a   : > { %v1108_v8 = vpop.eup %1107  ;;  %v817_v11 = vmul.f32 0.6931472, %v1106_v6 }
 0x17b   : > { %v1110_v12 = vpop.eup %1109  ;;  %823 = vst.msk [vmem:[%s212_s24] sm:$0xff] %vm822_vm5, %v815_v7  ;;  %v819_v13 = vmul.f32 0.6931472, %v1108_v8 }
 0x17c   : > { %824 = vst.msk [vmem:[%s212_s24 + $0x8] sm:$0xff] %vm822_vm5, %v817_v11  ;;  %v821_v14 = vmul.f32 0.6931472, %v1110_v12 }
 0x17d   : > { %825 = vst.msk [vmem:[%s212_s24 + $0x10] sm:$0xff] %vm822_vm5, %v819_v13 }
 0x17e   : > { %827 = vst.msk [vmem:[%s212_s24 + $0x18] sm:$0x1] %vm826_vm6, %v821_v14 }
 0x17f PF: > { %s15_s15 = sadd.s32 1, %s1149_s15  }
 0x180   : > { %p12_p3 = scmp.ge.s32.totalorder %s15_s15, 4  }
 0x182   :  { %14 = sbr.rel (!%p12_p3) target bundleno = 1 (0x1), region = 73 }
 0x189   :  { %849 = vsyncpa [#allocation3], 1 }
 0x18a   :  { %851 = vsyncpa [#allocation3 + $0x1], 1 }

// kernel: a_call__.3
= control target key start
LH: loop header
LB: loop body
LE: loop exit
PB: predicated region body
PF: predicated region fallthrough
CT: control target
= control target key end

     0   :  { %s793_s15 = smov 0   ;;  %s795_s16 = smov 0   ;;  %s941_s0 = inlined_call_operand.vmem [shape: f32[2,40,25], index: 0, kind: input, shape index: {}]   ;;  %s942_s1 = inlined_call_operand.vmem [shape: f32[2,40,1], index: 1, kind: input, shape index: {}]   ;;  %s943_s2 = inlined_call_operand.vmem [shape: f32[2,40,1], index: 2, kind: input, shape index: {}]   ;;  %s944_s3 = inlined_call_operand.vmem [shape: f32[2,40,1], index: 3, kind: input, shape index: {}]   ;;  %s945_s4 = inlined_call_operand.vmem [shape: f32[2,2,40,25], index: 4, kind: output, shape index: {}]  }
   0x1   :  { %s797_s17 = smov 0   ;;  %s799_s18 = smov 0  }
   0x2   :  { %s801_s19 = smov 0   ;;  %s803_s20 = smov 0  }
   0x3   :  { %s805_s21 = smov 0   ;;  %s807_s22 = smov 0  }
   0x4   :  { %s809_s23 = smov 0  }
   0x5 LB: > { %s23_s24 = sadd.s32 1, %s757_s21  ;;  %s26_s25 = sadd.s32 1, %s761_s22  ;;  %s765_s23 = sphi %s809_s23, %s14_s23   ;;  %s761_s22 = sphi %s807_s22, %s958_s22   ;;  %s757_s21 = sphi %s805_s21, %s957_s21   ;;  %s753_s20 = sphi %s803_s20, %s956_s20   ;;  %s749_s19 = sphi %s801_s19, %s955_s19   ;;  %s745_s18 = sphi %s799_s18, %s954_s18   ;;  %s741_s17 = sphi %s797_s17, %s953_s17   ;;  %s737_s16 = sphi %s795_s16, %s952_s16   ;;  %s733_s15 = sphi %s793_s15, %s951_s15  }
   0x6   : > { %p24_p0 = scmp.ge.s32.totalorder %s23_s24, 2  ;;  %p40_p1 = scmp.ne.s32.totalorder %s745_s18, %s741_s17 }
   0x7   : > { %s598_s26 = sadd.s32 4294967295, %s765_s23   ;;  %p41_p2 = scmp.eq.s32.totalorder %s765_s23, 0 }
   0x8   : > { %s960_s24 = smov (%p24_p0, %s23_s24), 0  ;;  %s962_s25 = smov (!%p24_p0, %s26_s25), %s761_s22 }
   0x9   : > { %p28_p3 = scmp.ge.s32.totalorder %s962_s25, 5  ;;  %s138_s27 = ssub.s32 %s757_s21, %s960_s24 }
   0xa   : > { %p849_p4 = por %p41_p2, %p40_p1  ;;  %p153_p5 = scmp.ne.s32.totalorder %s737_s16, %s733_s15 }
   0xb   : > { %s964_s25 = smov (%p28_p3, %s962_s25), 0  ;;  %s33_s29 = sadd.s32 1, %s745_s18 }
   0xc   : > { %948 = sst [smem:[#allocation5_spill]] %s964_s25  ;;  %p154_p6 = scmp.eq.s32.totalorder %s598_s26, 9 }
   0xd   : > { %s30_s30 = ssub.s32 %s761_s22, %s964_s25  ;;  %s143_s5 = sadd.s32 1, %s737_s16 }
   0xe   : > { %p31_p7 = scmp.eq.s32.totalorder %s30_s30, 0  ;;  %s140_s6 = sor.u32 %s138_s27, %s30_s30 }
   0xf   : > { %p141_p8 = scmp.eq.s32.totalorder %s140_s6, 0  ;;  %p861_p9 = por %p154_p6, %p153_p5 }
  0x10   : > { %s866_s8 = scalar_select %p31_p7, %s745_s18, %s33_s29  }
  0x11   : > { %s869_s9 = scalar_select %p141_p8, %s737_s16, %s143_s5  }
  0x12   : > { %p601_p10 = scmp.ge.s32.totalorder %s765_s23, 10 }
  0x14   : > { %176 = sbr.rel (%p601_p10) target bundleno = 41 (0x29), region = 16 }
  0x1b   : > { %179 = sbr.rel (!%p849_p4) target bundleno = 34 (0x22), region = 20  ;;  %s181_s10 = sand.u32 (%p849_p4), 1, %s745_s18  }
  0x1c   : > { %s603_s11 = sshll.u32 (%p849_p4), %s761_s22, 3  ;;  %s602_s12 = sshll.u32 (%p849_p4), %s181_s10, 4 }
  0x1d   : > { %s185_s26 = scalar_lea.vmem (%p849_p4), %s941_s0, %s603_s11  ;;  %s183_s27 = scalar_lea.vmem (%p849_p4), [#allocation2], %s602_s12 }
  0x1e   : > { %v215_v0 = vld [vmem:[%s185_s26] sm:$0xff] (%p849_p4)  ;;  %v217_v1 = vld [vmem:[%s185_s26 + $0x28] sm:$0xff] (%p849_p4) }
  0x1f   : > { %216 = vst [vmem:[%s183_s27] sm:$0xff] (%p849_p4), %v215_v0  ;;  %218 = vst [vmem:[%s183_s27 + $0x8] sm:$0xff] (%p849_p4), %v217_v1 }
  0x22 PF: > { %224 = sbr.rel (!%p849_p4) target bundleno = 41 (0x29), region = 58  ;;  %s226_s29 = sand.u32 (%p849_p4), 1, %s745_s18  }
  0x23   : > { %s605_s30 = sshll.u32 (%p849_p4), %s761_s22, 3  ;;  %s604_s5 = sshll.u32 (%p849_p4), %s226_s29, 4 }
  0x24   : > { %s230_s25 = scalar_lea.vmem (%p849_p4), %s942_s1, %s605_s30  ;;  %s228_s11 = scalar_lea.vmem (%p849_p4), [#allocation3], %s604_s5 }
  0x25   : > { %v260_v2 = vld [vmem:[%s230_s25] sm:$0xff] (%p849_p4)  ;;  %v262_v3 = vld [vmem:[%s230_s25 + $0x28] sm:$0xff] (%p849_p4) }
  0x26   : > { %261 = vst [vmem:[%s228_s11] sm:$0xff] (%p849_p4), %v260_v2  ;;  %263 = vst [vmem:[%s228_s11 + $0x8] sm:$0xff] (%p849_p4), %v262_v3 }
  0x29 PF: > { %p606_p11 = scmp.ge.s32.totalorder %s765_s23, 1  ;;  %p290_p12 = scmp.lt.s32.totalorder %s765_s23, 11 }
  0x2b   : > { %p291_p13 = pnand %p606_p11, %p290_p12 }
  0x2c   : > { %s297_s28 = sand.u32 (!%p291_p13), 1, %s741_s17   ;;  %s364_s12 = scvt.s32.f32 (!%p291_p13), %s749_s19  ;;  %v767_v4 = vmov (!%p291_p13), 0   ;;  %vm384_vm0 = vcmask (!%p291_p13), 203776  }
  0x2d   : > { %294 = sbr.rel (%p291_p13) target bundleno = 510 (0x1fe), region = 104  ;;  %691 = vset.pattern.permute.xlu0 (!%p291_p13), %v767_v4  ;;  %s607_s13 = sshll.u32 (!%p291_p13), %s297_s28, 4  ;;  %692 = vset.pattern.permute.xlu1 (!%p291_p13), %v767_v4 }
  0x2e   : > { %v369_v5 = vstv (!%p291_p13), %s364_s12  ;;  %s306_s25 = scalar_lea.vmem (!%p291_p13), [#allocation3], %s607_s13  ;;  %s299_s14 = scalar_lea.vmem (!%p291_p13), [#allocation2], %s607_s13 }
  0x2f   : > { %v367_v6 = vld [vmem:[%s306_s25] sm:$0xff] (!%p291_p13)  ;;  %v368_v7 = vld [vmem:[%s306_s25 + $0x8] sm:$0xff] (!%p291_p13)  ;;  %p348_p0 = scmp.lt.s32.totalorder (!%p291_p13), %s749_s19, 1  ;;  %p350_p1 = scmp.lt.s32.totalorder (!%p291_p13), %s753_s20, 4 }
  0x30   : > { %v370_v8 = vmul.f32 (!%p291_p13), %v369_v5, %v367_v6  ;;  %v371_v9 = vmul.f32 (!%p291_p13), %v369_v5, %v368_v7  ;;  %v365_v10 = vld [vmem:[%s299_s14] sm:$0xff] (!%p291_p13)  ;;  %v366_v13 = vld [vmem:[%s299_s14 + $0x8] sm:$0xff] (!%p291_p13)  ;;  %s345_s13 = sand.u32 (!%p291_p13), 1, %s733_s15  }
  0x31   : > { %s609_s25 = sshll.u32 (!%p291_p13), %s345_s13, 4 }
  0x32   : > { %374 = vperm.xlu0 (!%p291_p13), %691, %v370_v8   ;;  %s347_s14 = scalar_lea.vmem (!%p291_p13), [#allocation4], %s609_s25 }
  0x34   : > { %s349_s17 = scalar_select %p348_p0, %s749_s19, 1 }
  0x35   : > { %s351_s26 = scalar_select %p350_p1, %s753_s20, 4 }
  0x36   : > { %379 = vperm.xlu0 %691, %v371_v9   ;;  %s616_s27 = smul.u32 5, %s349_s17 }
  0x37   : > { %s617_s15 = smul.u32 (%p861_p9), 5, %s749_s19 }
  0x38   : > { %s353_s29 = sadd.s32 %s616_s27, %s351_s26 }
  0x39   : > { %s610_s30 = sshll.u32 %s353_s29, 3  ;;  %s435_s17 = sadd.s32 (%p861_p9), %s753_s20, %s617_s15 }
  0x3a   : > { %s355_s10 = scalar_lea.vmem %s943_s2, %s610_s30  ;;  %s363_s12 = scalar_lea.vmem %s944_s3, %s610_s30 }
  0x3b   : > { %v409_v18 = vld [vmem:[%s355_s10] sm:$0xff]  ;;  %s613_s26 = sshll.u32 (%p861_p9), %s435_s17, 3 }
  0x3c   : > { %v417_v29 = vld [vmem:[%s363_s12] sm:$0xff]  ;;  %s437_s30 = scalar_lea.vmem (%p861_p9), %s945_s4, %s613_s26 }
  0xb1   : > { %v375_v11 = vpop.permute.xlu0 %374 }
  0xb2   : > { %v382_v12 = vsub.f32 %v365_v10, %v375_v11 }
  0xb4   : > { %v385_v14 = vsel %vm384_vm0, %v382_v12, 0.0 }
  0xb5   : > { %v380_v15 = vpop.permute.xlu0 %379  ;;  %386 = vadd.xlane.f32.xlu1 %v385_v14 }
  0xb6   : > { %v383_v16 = vsub.f32 %v366_v13, %v380_v15 }
  0xb8   : > { %v388_v17 = vsel %vm384_vm0, %v383_v16, 0.0 }
  0xb9   : > { %389 = vadd.xlane.f32.xlu1 %v388_v17 }
  0xca   : > { %412 = vperm.xlu1 %692, %v409_v18  }
 0x142   : > { %v387_v19 = vpop.xlane.xlu1 %386 }
 0x146   : > { %v390_v20 = vpop.xlane.xlu1 %389 }
 0x147   : > { %v391_v21 = vadd.f32 %v390_v20, %v387_v19 }
 0x149   : > { %v392_v22 = vmul.f32 0.02, %v391_v21 }
 0x14a   : > { %v413_v30 = vpop.permute.xlu1 %412 }
 0x14b   : > { %v393_v23 = vsub.f32 %v382_v12, %v392_v22  ;;  %v394_v24 = vsub.f32 %v383_v16, %v392_v22 }
 0x14d   : > { %v396_v25 = vmul.f32 %v394_v24, %v394_v24  ;;  %v395_v26 = vmul.f32 %v393_v23, %v393_v23 }
 0x14f   : > { %v400_v27 = vsel %vm384_vm0, %v396_v25, 0.0  ;;  %v397_v28 = vsel %vm384_vm0, %v395_v26, 0.0 }
 0x150   : > { %401 = vadd.xlane.f32.xlu1 %v400_v27  ;;  %398 = vadd.xlane.f32.xlu0 %v397_v28 }
 0x161   : > { %420 = vperm.xlu1 %692, %v417_v29  }
 0x1dd   : > { %v399_v31 = vpop.xlane.xlu0 %398  ;;  %v402_v32 = vpop.xlane.xlu1 %401 }
 0x1de   : > { %v403_v33 = vadd.f32 %v402_v32, %v399_v31 }
 0x1e0   : > { %v404_v34 = vmul.f32 0.02, %v403_v33 }
 0x1e1   : > { %v421_v41 = vpop.permute.xlu1 %420 }
 0x1e2   : > { %v405_v35 = vadd.f32 1e-05, %v404_v34 }
 0x1e4   : > { %693 = vrsqrt.f32 %v405_v35 }
 0x1ee   : > { %v694_v36 = vpop.eup %693 }
 0x1ef   : > { %v407_v37 = vmul.f32 %v694_v36, %v393_v23  ;;  %v408_v38 = vmul.f32 %v694_v36, %v394_v24  ;;  %433 = sbr.rel (!%p861_p9) target bundleno = 510 (0x1fe), region = 116 }
 0x1f1   : > { %v415_v39 = vmul.f32 %v413_v30, %v407_v37  ;;  %v416_v40 = vmul.f32 %v413_v30, %v408_v38 }
 0x1f3   : > { %v423_v42 = vadd.f32 %v421_v41, %v415_v39  ;;  %v424_v43 = vadd.f32 %v421_v41, %v416_v40 }
 0x1f5   : > { %425 = vst.msk [vmem:[%s347_s14] sm:$0xff] %vm384_vm0, %v423_v42  ;;  %426 = vst.msk [vmem:[%s347_s14 + $0x8] sm:$0xff] %vm384_vm0, %v424_v43 }
 0x1fc   : > { %v467_v44 = vld [vmem:[%s347_s14] sm:$0xff]  ;;  %v469_v45 = vld [vmem:[%s347_s14 + $0x8] sm:$0xff] }
 0x1fd   : > { %468 = vst [vmem:[%s437_s30] sm:$0xff] %v467_v44  ;;  %470 = vst [vmem:[%s437_s30 + $0x50] sm:$0xff] %v469_v45 }
 0x1fe PF: > { %s14_s23 = sadd.s32 1, %s765_s23   ;;  %s950_s7 = sld [smem:[#allocation5_spill]] }
 0x1ff   : > { %p11_p2 = scmp.ge.s32.totalorder %s14_s23, 12   ;;  %s951_s15 = smov %s737_s16 }
 0x200   : > { %s952_s16 = smov %s869_s9  ;;  %s953_s17 = smov %s745_s18 }
 0x201   : > { %s954_s18 = smov %s866_s8  ;;  %s955_s19 = smov %s757_s21 }
 0x202   : > { %s956_s20 = smov %s761_s22  ;;  %s957_s21 = smov %s960_s24 }
 0x203   :  { %13 = sbr.rel (!%p11_p2) target bundleno = 5 (0x5), region = 199 }
 0x204   : > { %s958_s22 = smov %s950_s7 }

</bundles_post_ra>
